<compile_context>
chip_gen: v7x
topology: tpu7x:2x2x1
jax: 0.10.0
libtpu: 0.0.40
codegen_flags: <defaults>
</compile_context>

<pallas_src>
import functools

import jax
import jax.numpy as jnp
from jax.experimental import pallas as pl
from jax.experimental.pallas import tpu as pltpu

LANE = 128
SUBLANE = 8


def _cdiv(a, b):
    return (a + b - 1) // b


def _round_up(x, m):
    return _cdiv(x, m) * m


def _round_down(x, m):
    return (x // m) * m


def _vmem_capacity_bytes():
    """Physical VMEM per TensorCore; conservative fallback if unqueryable."""
    try:
        info = pltpu.get_tpu_info()
        for attr in ("vmem_capacity_bytes", "vmem_size_bytes", "vmem_bytes"):
            cap = getattr(info, attr, None)
            if cap:
                return int(cap)
    except Exception:
        pass
    return 64 * 1024 * 1024  # v7x per-core size; safe lower bound everywhere


def _dino_head_kernel(x_ref, w1_ref, b1_ref, w2_ref, b2_ref, out_ref, acc_ref,
                      *, inv_seq_len, seq_len, seq_tile, mask_last):
    """Fused seq-mean + (Linear -> ReLU -> Linear) head.

    grid = (batch tile [parallel], seq tile [arbitrary / reduction]).
    acc_ref holds the f32 running token-sum for the current batch tile.
    """
    s = pl.program_id(1)
    num_s = pl.num_programs(1)

    @pl.when(s == 0)
    def _init():
        acc_ref[...] = jnp.zeros_like(acc_ref)

    if mask_last:
        # S is not a multiple of the seq tile: the last tile's tail tokens are
        # undefined (no HBM padding was materialized) and must not reach the
        # sum.  Only the last tile pays for the mask.
        @pl.when(s < num_s - 1)
        def _full_tile():
            acc_ref[...] += jnp.sum(x_ref[...], axis=1, dtype=jnp.float32)

        @pl.when(s == num_s - 1)
        def _tail_tile():
            tok = s * seq_tile + jax.lax.broadcasted_iota(
                jnp.int32, x_ref.shape, 1)
            x = x_ref[...]
            x = jnp.where(tok < seq_len, x, jnp.zeros_like(x))
            acc_ref[...] += jnp.sum(x, axis=1, dtype=jnp.float32)
    else:
        acc_ref[...] += jnp.sum(x_ref[...], axis=1, dtype=jnp.float32)

    @pl.when(s == num_s - 1)
    def _finalize():
        feats = acc_ref[...] * inv_seq_len                  # (TB, H) mean, f32

        # classifier[0]: Linear(H -> D1)
        inter = jnp.dot(feats.astype(w1_ref.dtype), w1_ref[...],
                        preferred_element_type=jnp.float32)
        inter = inter + b1_ref[...].astype(jnp.float32)

        # classifier[1]: ReLU
        act = jnp.maximum(inter, 0.0)

        # classifier[2]: Linear(D1 -> C)
        logits = jnp.dot(act.astype(w2_ref.dtype), w2_ref[...],
                         preferred_element_type=jnp.float32)
        logits = logits + b2_ref[...].astype(jnp.float32)

        out_ref[...] = logits.astype(out_ref.dtype)


def dino_classifier(x, w1, b1, w2, b2, *, out_dtype=jnp.float32,
                    seq_tile=None, batch_tile=None):
    """logits = relu(mean_tokens(x) @ w1 + b1) @ w2 + b2.

    x:  (B, S, H) backbone last_hidden_state.
    w1: (H, D1), b1: (D1,);  w2: (D1, C), b2: (C,).
    Weights stored as (in_features, out_features) so y = x @ W + b matches
    nn.Linear (which stores W transposed).
    """
    B, S, H = x.shape
    D1 = w1.shape[1]
    C = w2.shape[1]

    itemsize = jnp.dtype(x.dtype).itemsize
    # second-to-last block dim alignment: 8 for 32-bit, 16 for bf16, 32 for i8
    seq_align = max(SUBLANE, 32 // itemsize)

    vmem_cap = _vmem_capacity_bytes()
    # Per-buffer budget for the streamed x tile: 2x double-buffered x tiles +
    # resident weights + accumulator must sit comfortably inside VMEM.
    if vmem_cap <= 64 * 1024 * 1024:          # v7x: 64 MiB / TensorCore
        x_tile_budget = 8 * 1024 * 1024
    else:                                      # v5e / v6e: 128 MiB
        x_tile_budget = 14 * 1024 * 1024

    # ---- sequence tile ------------------------------------------------------
    if seq_tile is not None:
        ts = int(seq_tile)
    else:
        tb_probe = min(B, SUBLANE)
        max_ts = max(seq_align, x_tile_budget // max(1, tb_probe * H * itemsize))
        if S <= max_ts:
            ts = S                                    # whole sequence per tile
        else:
            ts = max(seq_align, _round_down(min(max_ts, 1024), seq_align))

    # ---- batch tile ---------------------------------------------------------
    if batch_tile is not None:
        tb = int(batch_tile)
    else:
        max_tb = max(1, x_tile_budget // max(1, ts * H * itemsize))
        if B <= SUBLANE:
            tb = B                                    # tiny batch: single tile
        else:
            tb = max(SUBLANE, _round_down(min(max_tb, B, 256), SUBLANE))
            # keep >= 2 batch tiles so the "parallel" batch axis can be split
            # across v7x's two TensorCores (no-op on single-TC parts)
            if B >= 2 * SUBLANE:
                tb = min(tb, max(SUBLANE, _round_down(_cdiv(B, 2), SUBLANE)))

    grid = (_cdiv(B, tb), _cdiv(S, ts))
    mask_last = (S % ts) != 0

    # Lane-pad the tiny head weights so MXU tiles / output stores are
    # lane-dense.  (Weight-sized copies only; negligible next to streaming x.)
    d1_pad = _round_up(D1, LANE)
    c_pad = _round_up(C, LANE)
    w1p = jnp.pad(w1, ((0, 0), (0, d1_pad - D1)))
    b1p = jnp.pad(jnp.reshape(b1, (1, D1)), ((0, 0), (0, d1_pad - D1)))
    w2p = jnp.pad(w2, ((0, d1_pad - D1), (0, c_pad - C)))
    b2p = jnp.pad(jnp.reshape(b2, (1, C)), ((0, 0), (0, c_pad - C)))

    kernel = functools.partial(
        _dino_head_kernel,
        inv_seq_len=1.0 / float(S),
        seq_len=S,
        seq_tile=ts,
        mask_last=mask_last,
    )

    # ---- VMEM footprint -> vmem_limit_bytes ---------------------------------
    def nbytes(shape, dtype):
        n = 1
        for d in shape:
            n *= d
        return n * jnp.dtype(dtype).itemsize

    x_tile_bytes = nbytes((tb, ts, H), x.dtype)
    w_bytes = (nbytes((H, d1_pad), w1p.dtype) + nbytes((1, d1_pad), b1p.dtype)
               + nbytes((d1_pad, c_pad), w2p.dtype) + nbytes((1, c_pad), b2p.dtype))
    out_tile_bytes = nbytes((tb, c_pad), out_dtype)
    acc_bytes = nbytes((tb, H), jnp.float32)
    need = (2 * x_tile_bytes + 2 * w_bytes + 2 * out_tile_bytes + acc_bytes
            + 8 * 1024 * 1024)
    vmem_limit = int(min(max(need, 48 * 1024 * 1024), (vmem_cap * 3) // 4))

    flops = int(B * S * H + 2 * B * H * d1_pad + 2 * B * d1_pad * c_pad)
    bytes_accessed = int(
        x.size * itemsize
        + w1p.size * jnp.dtype(w1p.dtype).itemsize
        + b1p.size * jnp.dtype(b1p.dtype).itemsize
        + w2p.size * jnp.dtype(w2p.dtype).itemsize
        + b2p.size * jnp.dtype(b2p.dtype).itemsize
        + B * c_pad * jnp.dtype(out_dtype).itemsize)

    out = pl.pallas_call(
        kernel,
        out_shape=jax.ShapeDtypeStruct((B, c_pad), out_dtype),
        grid_spec=pltpu.PrefetchScalarGridSpec(
            num_scalar_prefetch=0,
            grid=grid,
            in_specs=[
                # streamed activations: (TB, TS, H) tiles, double-buffered
                pl.BlockSpec((tb, ts, H), lambda b, s: (b, s, 0)),
                # head weights / biases: constant index_map -> fetched once
                pl.BlockSpec((H, d1_pad), lambda b, s: (0, 0)),
                pl.BlockSpec((1, d1_pad), lambda b, s: (0, 0)),
                pl.BlockSpec((d1_pad, c_pad), lambda b, s: (0, 0)),
                pl.BlockSpec((1, c_pad), lambda b, s: (0, 0)),
            ],
            out_specs=pl.BlockSpec((tb, c_pad), lambda b, s: (b, 0)),
            scratch_shapes=[pltpu.VMEM((tb, H), jnp.float32)],
        ),
        compiler_params=pltpu.CompilerParams(
            dimension_semantics=("parallel", "arbitrary"),
            vmem_limit_bytes=vmem_limit,
        ),
        cost_estimate=pl.CostEstimate(
            flops=flops, transcendentals=0, bytes_accessed=bytes_accessed),
    )(x, w1p, b1p, w2p, b2p)

    return out[:, :C]


def reference(x, w1, b1, w2, b2):
    feats = jnp.mean(x.astype(jnp.float32), axis=1)
    inter = jnp.dot(feats, w1.astype(jnp.float32)) + jnp.reshape(b1, (1, -1))
    act = jnp.maximum(inter, 0.0)
    return jnp.dot(act, w2.astype(jnp.float32)) + jnp.reshape(b2, (1, -1))


if __name__ == "__main__":
    base_key = jax.random.PRNGKey(0)

    def run_case(case_id, B, S, H, D1, C, **kw):
        kx, kw1, kb1, kw2, kb2 = jax.random.split(
            jax.random.fold_in(base_key, case_id), 5)
        x = jax.random.normal(kx, (B, S, H), dtype=jnp.float32)   # last_hidden_state
        w1 = jax.random.normal(kw1, (H, D1), dtype=jnp.float32) * 0.05
        b1 = jax.random.normal(kb1, (D1,), dtype=jnp.float32) * 0.05
        w2 = jax.random.normal(kw2, (D1, C), dtype=jnp.float32) * 0.05
        b2 = jax.random.normal(kb2, (C,), dtype=jnp.float32) * 0.05

        logits = jax.block_until_ready(dino_classifier(x, w1, b1, w2, b2, **kw))
        ref = reference(x, w1, b1, w2, b2)
        assert logits.shape == (B, C), f"case {case_id}: bad shape {logits.shape}"
        assert jnp.allclose(logits, ref, atol=1e-4, rtol=1e-4), \
            f"case {case_id}: mismatch vs reference"

    # Small shapes consistent with the module forward
    # (B images, S tokens, H hidden; head: Linear(H->D1) -> ReLU -> Linear(D1->C)).
    run_case(0, B=2, S=8, H=32, D1=32, C=4)
    # Exercise a partial batch tile and the masked (partial) final seq tile.
    run_case(1, B=10, S=300, H=32, D1=32, C=4, seq_tile=128)

    print("KERNEL_OK")
</pallas_src>

<mosaic_0001>
module attributes {stable_mosaic.version = 11 : i64} {
  func.func @_dino_head_kernel(%arg0: i32, %arg1: i32, %arg2: memref<2x8x32xf32, #tpu.memory_space<vmem>>, %arg3: memref<32x128xf32, #tpu.memory_space<vmem>>, %arg4: memref<1x128xf32, #tpu.memory_space<vmem>>, %arg5: memref<128x128xf32, #tpu.memory_space<vmem>>, %arg6: memref<1x128xf32, #tpu.memory_space<vmem>>, %arg7: memref<2x128xf32, #tpu.memory_space<vmem>>, %arg8: memref<2x32xf32, #tpu.memory_space<vmem>>) attributes {dimension_semantics = [#tpu.dimension_semantics<parallel>, #tpu.dimension_semantics<arbitrary>], iteration_bounds = array<i64: 1, 1>, scalar_prefetch = 0 : i64, scratch_operands = 1 : i64, tpu.core_type = #tpu.core_type<tc>, window_params = [{transform_indices = @transform_0, window_bounds = array<i64: 2, 8, 32>}, {pipeline_mode = #tpu.pipeline_mode<synchronous>, transform_indices = @transform_1, window_bounds = array<i64: 32, 128>}, {pipeline_mode = #tpu.pipeline_mode<synchronous>, transform_indices = @transform_2, window_bounds = array<i64: 1, 128>}, {pipeline_mode = #tpu.pipeline_mode<synchronous>, transform_indices = @transform_3, window_bounds = array<i64: 128, 128>}, {pipeline_mode = #tpu.pipeline_mode<synchronous>, transform_indices = @transform_4, window_bounds = array<i64: 1, 128>}, {transform_indices = @transform_5, window_bounds = array<i64: 2, 128>}]} {
    %c0_i32 = arith.constant 0 : i32
    %0 = arith.cmpi eq, %arg1, %c0_i32 : i32
    %1 = arith.extui %0 : i1 to i32
    %c0_i32_0 = arith.constant 0 : i32
    %2 = arith.cmpi ne, %1, %c0_i32_0 : i32
    scf.if %2 {
      %cst_9 = arith.constant 0.000000e+00 : f32
      %11 = vector.broadcast %cst_9 : f32 to vector<2x32xf32>
      %c0_10 = arith.constant 0 : index
      %c0_11 = arith.constant 0 : index
      %12 = vector.load %arg8[%c0_10, %c0_11] : memref<2x32xf32, #tpu.memory_space<vmem>>, vector<2x32xf32>
      tpu.vector_store %arg8[%c0_10, %c0_11], %11 {strides = array<i32>} : memref<2x32xf32, #tpu.memory_space<vmem>>, vector<2x32xf32>,
    } else {
    }
    %c0 = arith.constant 0 : index
    %c0_1 = arith.constant 0 : index
    %3 = vector.load %arg8[%c0, %c0_1] : memref<2x32xf32, #tpu.memory_space<vmem>>, vector<2x32xf32>
    %c0_2 = arith.constant 0 : index
    %c0_3 = arith.constant 0 : index
    %c0_4 = arith.constant 0 : index
    %4 = vector.load %arg2[%c0_2, %c0_3, %c0_4] : memref<2x8x32xf32, #tpu.memory_space<vmem>>, vector<2x8x32xf32>
    %cst = arith.constant dense<0.000000e+00> : vector<2x32xf32>
    %5 = vector.multi_reduction <add>, %4, %cst [1] : vector<2x8x32xf32> to vector<2x32xf32>
    %6 = arith.addf %3, %5 : vector<2x32xf32>
    %c0_5 = arith.constant 0 : index
    %c0_6 = arith.constant 0 : index
    %7 = vector.load %arg8[%c0_5, %c0_6] : memref<2x32xf32, #tpu.memory_space<vmem>>, vector<2x32xf32>
    tpu.vector_store %arg8[%c0_5, %c0_6], %6 {strides = array<i32>} : memref<2x32xf32, #tpu.memory_space<vmem>>, vector<2x32xf32>,
    %c0_i32_7 = arith.constant 0 : i32
    %8 = arith.cmpi eq, %arg1, %c0_i32_7 : i32
    %9 = arith.extui %8 : i1 to i32
    %c0_i32_8 = arith.constant 0 : i32
    %10 = arith.cmpi ne, %9, %c0_i32_8 : i32
    scf.if %10 {
      %c0_9 = arith.constant 0 : index
      %c0_10 = arith.constant 0 : index
      %11 = vector.load %arg8[%c0_9, %c0_10] : memref<2x32xf32, #tpu.memory_space<vmem>>, vector<2x32xf32>
      %cst_11 = arith.constant 1.250000e-01 : f32
      %12 = vector.broadcast %cst_11 : f32 to vector<2x32xf32>
      %13 = arith.mulf %11, %12 : vector<2x32xf32>
      %c0_12 = arith.constant 0 : index
      %c0_13 = arith.constant 0 : index
      %14 = vector.load %arg3[%c0_12, %c0_13] : memref<32x128xf32, #tpu.memory_space<vmem>>, vector<32x128xf32>
      %cst_14 = arith.constant dense<0.000000e+00> : vector<2x128xf32>
      %15 = tpu.matmul %13, %14, %cst_14 {dimension_numbers = #tpu.dot_dimension_numbers<[1], [0], [0], [1], [0, 0, 1, 1], [], []>} : vector<2x32xf32>, vector<32x128xf32>, vector<2x128xf32> -> vector<2x128xf32>
      %c0_15 = arith.constant 0 : index
      %c0_16 = arith.constant 0 : index
      %16 = vector.load %arg4[%c0_15, %c0_16] : memref<1x128xf32, #tpu.memory_space<vmem>>, vector<1x128xf32>
      %17 = vector.broadcast %16 : vector<1x128xf32> to vector<2x128xf32>
      %18 = arith.addf %15, %17 : vector<2x128xf32>
      %cst_17 = arith.constant 0.000000e+00 : f32
      %19 = vector.broadcast %cst_17 : f32 to vector<2x128xf32>
      %20 = arith.maximumf %18, %19 : vector<2x128xf32>
      %c0_18 = arith.constant 0 : index
      %c0_19 = arith.constant 0 : index
      %21 = vector.load %arg5[%c0_18, %c0_19] : memref<128x128xf32, #tpu.memory_space<vmem>>, vector<128x128xf32>
      %cst_20 = arith.constant dense<0.000000e+00> : vector<2x128xf32>
      %22 = tpu.matmul %20, %21, %cst_20 {dimension_numbers = #tpu.dot_dimension_numbers<[1], [0], [0], [1], [0, 0, 1, 1], [], []>} : vector<2x128xf32>, vector<128x128xf32>, vector<2x128xf32> -> vector<2x128xf32>
      %c0_21 = arith.constant 0 : index
      %c0_22 = arith.constant 0 : index
      %23 = vector.load %arg6[%c0_21, %c0_22] : memref<1x128xf32, #tpu.memory_space<vmem>>, vector<1x128xf32>
      %24 = vector.broadcast %23 : vector<1x128xf32> to vector<2x128xf32>
      %25 = arith.addf %22, %24 : vector<2x128xf32>
      %c0_23 = arith.constant 0 : index
      %c0_24 = arith.constant 0 : index
      %26 = vector.load %arg7[%c0_23, %c0_24] : memref<2x128xf32, #tpu.memory_space<vmem>>, vector<2x128xf32>
      tpu.vector_store %arg7[%c0_23, %c0_24], %25 {strides = array<i32>} : memref<2x128xf32, #tpu.memory_space<vmem>>, vector<2x128xf32>,
    } else {
    }
    return
  }
  func.func @transform_0(%arg0: i32, %arg1: i32) -> (i32, i32, i32) {
    %c0_i32 = arith.constant 0 : i32
    %c0_i32_0 = arith.constant 0 : i32
    return %arg0, %arg1, %c0_i32 : i32, i32, i32
  }
  func.func @transform_1(%arg0: i32, %arg1: i32) -> (i32, i32) {
    %c0_i32 = arith.constant 0 : i32
    %c0_i32_0 = arith.constant 0 : i32
    %c0_i32_1 = arith.constant 0 : i32
    return %c0_i32, %c0_i32_0 : i32, i32
  }
  func.func @transform_2(%arg0: i32, %arg1: i32) -> (i32, i32) {
    %c0_i32 = arith.constant 0 : i32
    %c0_i32_0 = arith.constant 0 : i32
    %c0_i32_1 = arith.constant 0 : i32
    return %c0_i32, %c0_i32_0 : i32, i32
  }
  func.func @transform_3(%arg0: i32, %arg1: i32) -> (i32, i32) {
    %c0_i32 = arith.constant 0 : i32
    %c0_i32_0 = arith.constant 0 : i32
    %c0_i32_1 = arith.constant 0 : i32
    return %c0_i32, %c0_i32_0 : i32, i32
  }
  func.func @transform_4(%arg0: i32, %arg1: i32) -> (i32, i32) {
    %c0_i32 = arith.constant 0 : i32
    %c0_i32_0 = arith.constant 0 : i32
    %c0_i32_1 = arith.constant 0 : i32
    return %c0_i32, %c0_i32_0 : i32, i32
  }
  func.func @transform_5(%arg0: i32, %arg1: i32) -> (i32, i32) {
    %c0_i32 = arith.constant 0 : i32
    %c0_i32_0 = arith.constant 0 : i32
    return %arg0, %c0_i32 : i32, i32
  }
}

</mosaic_0001>

<bundles_post_ra>
// kernel: tpu_custom_call.1
= control target key start
LH: loop header
LB: loop body
LE: loop exit
PB: predicated region body
PF: predicated region fallthrough
CT: control target
= control target key end

     0   :  { %10 = vsyncpa [#allocation4], 0  ;;  %s622_s0 = inlined_call_operand.hbm [shape: f32[2,8,32], index: 0, kind: input, shape index: {}]   ;;  %s623_s1 = inlined_call_operand.hbm [shape: f32[32,128], index: 1, kind: input, shape index: {}]   ;;  %s624_s2 = inlined_call_operand.vmem [shape: f32[1,128], index: 2, kind: input, shape index: {}]   ;;  %s625_s3 = inlined_call_operand.hbm [shape: f32[128,128], index: 3, kind: input, shape index: {}]   ;;  %s626_s4 = inlined_call_operand.vmem [shape: f32[1,128], index: 4, kind: input, shape index: {}]   ;;  %s627_s5 = inlined_call_operand.hbm [shape: f32[2,128], index: 5, kind: output, shape index: {}]  }
   0x1   :  { %11 = vsyncpa [#allocation7], 0 }
   0x2   :  { %12 = vsyncpa [#allocation5], 0  ;;  %s498_s18 = smov [#allocation6]   ;;  %s499_s20 = smov [#allocation3]  }
   0x3   :  { %s30_s19 = sshll.u32 %s498_s18, 4  ;;  %s18_s21 = sshll.u32 %s499_s20, 4  ;;  %s31_s19 = int_to_ptr.vmem [resolvable:$true] %s30_s19  ;;  %s537_s21 = int_to_ptr.vmem [resolvable:$true] %s18_s21 }
   0x4   :  { %s404_s24 = scalar_lea.hbm %s623_s1, 512 }
   0x5   :  { %p405_p0 = scmp.ne.s32.totalorder %s623_s1, %s404_s24  ;;  %p408_p1 = scmp.lt.u32.totalorder %s404_s24, %s623_s1 }
   0x7   :  { %p410_p2 = pnand %p408_p1, %p405_p0 }
   0x9   :  { %413 = shalt.err (!%p410_p2)
}
   0xa   :  { %s414_s29 = scalar_lea.vmem %s31_s19, 512  ;;  %p419_p4 = scmp.lt.s32.totalorder %s31_s19, %s31_s19 }
   0xb   :  { %p415_p3 = scmp.ne.s32.totalorder %s31_s19, %s414_s29  ;;  %p420_p5 = scmp.lt.s32.totalorder %s414_s29, %s414_s29 }
   0xd   :  { %p421_p6 = por %p420_p5, %p419_p4 }
   0xf   :  { %p422_p7 = pnand %p421_p6, %p415_p3 }
  0x11   :  { %425 = shalt.err (!%p422_p7)
}
  0x12   :  { %s500_s30 = smov 128   ;;  %s501_s6 = smov 8  }
  0x13   :  { %36 = dma.hbm_to_vmem [thread:$0]  %s623_s1, 512, %s31_s19, [#allocation7], %s500_s30, %s500_s30, %s501_s6  }
  0x14   :  { %s426_s11 = scalar_lea.hbm %s622_s0, 256 }
  0x15   :  { %p427_p8 = scmp.ne.s32.totalorder %s622_s0, %s426_s11  ;;  %p430_p9 = scmp.lt.u32.totalorder %s426_s11, %s622_s0 }
  0x17   :  { %p432_p10 = pnand %p430_p9, %p427_p8 }
  0x19   :  { %435 = shalt.err (!%p432_p10)
}
  0x1a   :  { %s436_s16 = scalar_lea.vmem %s537_s21, 256  ;;  %p441_p12 = scmp.lt.s32.totalorder %s537_s21, %s537_s21 }
  0x1b   :  { %p437_p11 = scmp.ne.s32.totalorder %s537_s21, %s436_s16  ;;  %p442_p13 = scmp.lt.s32.totalorder %s436_s16, %s436_s16 }
  0x1d   :  { %p443_p0 = por %p442_p13, %p441_p12 }
  0x1f   :  { %p444_p1 = pnand %p443_p0, %p437_p11 }
  0x21   :  { %447 = shalt.err (!%p444_p1)
}
  0x22   :  { %24 = dma.hbm_to_vmem [thread:$0]  %s622_s0, 256, %s537_s21, [#allocation4], %s500_s30, %s500_s30, %s501_s6  }
  0x23   :  { %s502_s18 = smov [#allocation8]   ;;  %s448_s23 = scalar_lea.hbm %s625_s3, 2048 }
  0x24   :  { %s44_s19 = sshll.u32 %s502_s18, 4  ;;  %p449_p2 = scmp.ne.s32.totalorder %s625_s3, %s448_s23  ;;  %s45_s19 = int_to_ptr.vmem [resolvable:$true] %s44_s19 }
  0x25   :  { %p452_p3 = scmp.lt.u32.totalorder %s448_s23, %s625_s3 }
  0x27   :  { %p454_p4 = pnand %p452_p3, %p449_p2 }
  0x29   :  { %457 = shalt.err (!%p454_p4)
}
  0x2a   :  { %s458_s28 = scalar_lea.vmem %s45_s19, 2048  ;;  %p463_p6 = scmp.lt.s32.totalorder %s45_s19, %s45_s19 }
  0x2b   :  { %p459_p5 = scmp.ne.s32.totalorder %s45_s19, %s458_s28  ;;  %p464_p7 = scmp.lt.s32.totalorder %s458_s28, %s458_s28 }
  0x2d   :  { %p465_p8 = por %p464_p7, %p463_p6 }
  0x2f   :  { %p466_p9 = pnand %p465_p8, %p459_p5 }
  0x31   :  { %469 = shalt.err (!%p466_p9)
}
  0x32   :  { %50 = dma.hbm_to_vmem [thread:$0]  %s625_s3, 2048, %s45_s19, [#allocation7], %s500_s30, %s500_s30, %s501_s6  }
  0x33   :  { %492 = dma.done.wait [#allocation4], 256  }
  0x34   :  { %493 = vsyncadd [#allocation4], 4294967040 }
  0x35   :  { %494 = dma.done.wait [#allocation7], 2560  }
  0x36   :  { %495 = vsyncadd [#allocation7], 4294964736  ;;  %vm66_vm0 = vcmask 254976   ;;  %v503_v0 = vmov 0.0|0.0   ;;  %v504_v1 = vmov 0.0   ;;  %vm505_vm1 = vmmov 0  }
  0x37   :  { %365 = vmatprep.subr.bf16.mxu0 %v503_v0  ;;  %67 = vst.msk [vmem:[#allocation2] sm:$0x3] %vm66_vm0, %v504_v1  ;;  %327 = vmatprep.mubr.msk.f32.mxu0 %vm505_vm1, %v504_v1  ;;  %vm71_vm2 = vcmask 261120   ;;  %v99_v2 = vld [vmem:[#allocation6] sm:$0xff]  ;;  %v100_v3 = vld [vmem:[#allocation6 + $0x8] sm:$0xff]  ;;  %v101_v4 = vld [vmem:[#allocation6 + $0x10] sm:$0xff] }
  0x38   :  { %371 = vmatprep.subr.bf16.mxu1 %v503_v0  ;;  %362 = vmatprep.mubr.msk.f32.mxu1 %vm505_vm1, %v504_v1  ;;  %v366_v5 = vpack.c.bf16 %v100_v3, %v99_v2  ;;  %v102_v6 = vld [vmem:[#allocation6 + $0x18] sm:$0xff]  ;;  %v69_v7 = vld [vmem:[#allocation3] sm:$0xff]  ;;  %v184_v10 = vld [vmem:[#allocation8] sm:$0xff]  ;;  %vm88_vm3 = vcmask 1041409   ;;  %s506_s7 = smov [#allocation9]  }
  0x39   :  { %v70_v8 = vld [vmem:[#allocation3 + $0x8] sm:$0xff]  ;;  %v72_v9 = vsel %vm71_vm2, %v69_v7, 0.0  ;;  %v185_v11 = vld [vmem:[#allocation8 + $0x8] sm:$0xff]  ;;  %v369_v12 = vpack.c.bf16 %v102_v6, %v101_v4  ;;  %v186_v16 = vld [vmem:[#allocation8 + $0x10] sm:$0xff]  ;;  %s284_s8 = sshll.u32 %s506_s7, 4  ;;  %s285_s8 = int_to_ptr.vmem [resolvable:$true] %s284_s8 }
  0x3a   :  { %367 = vmatpush3.bf16.msra.mxu0 %v366_v5  ;;  %v73_v13 = vrot.slane %v72_v9, 4  ;;  %v79_v14 = vsel %vm71_vm2, %v70_v8, 0.0  ;;  %v372_v15 = vpack.c.bf16 %v185_v11, %v184_v10  ;;  %v187_v17 = vld [vmem:[#allocation8 + $0x18] sm:$0xff]  ;;  %v188_v22 = vld [vmem:[#allocation8 + $0x20] sm:$0xff]  ;;  %v189_v23 = vld [vmem:[#allocation8 + $0x28] sm:$0xff]  ;;  %s470_s9 = scalar_lea.vmem %s285_s8, 32  ;;  %p475_p11 = scmp.lt.s32.totalorder %s285_s8, %s285_s8 }
  0x3b   :  { %368 = vmatprep.subr.bf16.mxu0 %v503_v0  ;;  %v80_v18 = vrot.slane %v79_v14, 4  ;;  %v375_v20 = vpack.c.bf16 %v187_v17, %v186_v16  ;;  %v378_v27 = vpack.c.bf16 %v189_v23, %v188_v22  ;;  %v190_v29 = vld [vmem:[#allocation8 + $0x30] sm:$0xff]  ;;  %v191_v30 = vld [vmem:[#allocation8 + $0x38] sm:$0xff]  ;;  %v192_v37 = vld [vmem:[#allocation8 + $0x40] sm:$0xff]  ;;  %p471_p10 = scmp.ne.s32.totalorder %s285_s8, %s470_s9  ;;  %p476_p12 = scmp.lt.s32.totalorder %s470_s9, %s470_s9 }
  0x3c   :  { %v74_v19 = vadd.f32 %v73_v13, %v72_v9  ;;  %373 = vmatpush3.bf16.msra.mxu1 %v372_v15  ;;  %v381_v34 = vpack.c.bf16 %v191_v30, %v190_v29  ;;  %v193_v38 = vld [vmem:[#allocation8 + $0x48] sm:$0xff]  ;;  %v194_v42 = vld [vmem:[#allocation8 + $0x50] sm:$0xff]  ;;  %v195_v43 = vld [vmem:[#allocation8 + $0x58] sm:$0xff] }
  0x3d   :  { %v81_v21 = vadd.f32 %v80_v18, %v79_v14  ;;  %374 = vmatprep.subr.bf16.mxu1 %v503_v0  ;;  %v384_v41 = vpack.c.bf16 %v193_v38, %v192_v37  ;;  %v387_v44 = vpack.c.bf16 %v195_v43, %v194_v42  ;;  %v196_v45 = vld [vmem:[#allocation8 + $0x60] sm:$0xff]  ;;  %v197_v46 = vld [vmem:[#allocation8 + $0x68] sm:$0xff]  ;;  %v198_v50 = vld [vmem:[#allocation8 + $0x70] sm:$0xff]  ;;  %p477_p13 = por %p476_p12, %p475_p11 }
  0x3e   :  { %370 = vmatpush3.bf16.msra.mxu0 %v369_v12  ;;  %v75_v24 = vrot.slane %v74_v19, 2  ;;  %v68_v35 = vld [vmem:[#allocation2] sm:$0x3]  ;;  %v390_v47 = vpack.c.bf16 %v197_v46, %v196_v45  ;;  %v199_v51 = vld [vmem:[#allocation8 + $0x78] sm:$0xff] }
  0x3f   :  { %v82_v25 = vrot.slane %v81_v21, 2  ;;  %v393_v52 = vpack.c.bf16 %v199_v51, %v198_v50  ;;  %v294_v53 = vld [vmem:[%s624_s2] ss:$0 sm:$0xff]  ;;  %p478_p0 = pnand %p477_p13, %p471_p10 }
  0x40   :  { %v76_v26 = vadd.f32 %v75_v24, %v74_v19  ;;  %376 = vmatpush3.bf16.msra.mxu1 %v375_v20  ;;  %v296_v58 = vld [vmem:[%s626_s4] ss:$0 sm:$0xff] }
  0x41   :  { %v83_v28 = vadd.f32 %v82_v25, %v81_v21  ;;  %377 = vmatprep.subr.bf16.mxu1 %v503_v0 }
  0x42   :  { %v77_v31 = vrot.slane %v76_v26, 1 }
  0x43   :  { %v84_v32 = vrot.slane %v83_v28, 1 }
  0x44   :  { %v78_v33 = vadd.f32 %v77_v31, %v76_v26  ;;  %379 = vmatpush3.bf16.msra.mxu1 %v378_v27 }
  0x45   :  { %v85_v36 = vadd.f32 %v84_v32, %v83_v28  ;;  %380 = vmatprep.subr.bf16.mxu1 %v503_v0 }
  0x47   :  { %v89_v39 = vsel %vm88_vm3, %v85_v36, %v78_v33 }
  0x48   :  { %v91_v40 = vadd.f32 %v89_v39, %v68_v35  ;;  %382 = vmatpush3.bf16.msra.mxu1 %v381_v34 }
  0x49   :  { %383 = vmatprep.subr.bf16.mxu1 %v503_v0 }
  0x4a   :  { %93 = vst.msk [vmem:[#allocation2] sm:$0x3] %vm66_vm0, %v91_v40 }
  0x4c   :  { %385 = vmatpush3.bf16.msra.mxu1 %v384_v41 }
  0x4d   :  { %386 = vmatprep.subr.bf16.mxu1 %v503_v0 }
  0x50   :  { %388 = vmatpush3.bf16.msra.mxu1 %v387_v44 }
  0x51   :  { %v97_v48 = vld [vmem:[#allocation2] sm:$0x3]  ;;  %389 = vmatprep.subr.bf16.mxu1 %v503_v0 }
  0x52   :  { %v98_v49 = vmul.f32 0.125, %v97_v48 }
  0x54   :  { %328 = vmatmul.mubr.msk.f32.vlgmr.msra.gmra.mrb[0].mxu0 %vm71_vm2, %v98_v49  ;;  %391 = vmatpush3.bf16.msra.mxu1 %v390_v47 }
  0x55   :  { %392 = vmatprep.subr.bf16.mxu1 %v503_v0 }
  0x58   :  { %394 = vmatpush3.bf16.msra.mxu1 %v393_v52 }
 0x127   :  { %v179_v54 = vpop.f32.mrb[0].mxu0 }
 0x128   :  { %v180_v55 = vadd.f32 %v294_v53, %v179_v54  ;;  %v329_v56 = vpop.f32.mrb[1].mxu0 }
 0x12a   :  { %v183_v57 = vmax.f32 %v180_v55, 0.0 }
 0x12c   :  { %363 = vmatmul.mubr.f32.vlgmr.msra.gmra.mrb[0].mxu1 %v183_v57 }
 0x1ff   :  { %v273_v59 = vpop.f32.mrb[0].mxu1 }
 0x200   :  { %v274_v60 = vadd.f32 %v296_v58, %v273_v59  ;;  %v364_v61 = vpop.f32.mrb[1].mxu1 }
 0x202   :  { %277 = vst [vmem:[#allocation9] sm:$0x3] %v274_v60 }
 0x203   :  { %481 = shalt.err (!%p478_p0)
}
 0x204   :  { %s482_s11 = scalar_lea.hbm %s627_s5, 32 }
 0x205   :  { %p483_p1 = scmp.ne.s32.totalorder %s627_s5, %s482_s11  ;;  %p486_p2 = scmp.lt.u32.totalorder %s482_s11, %s627_s5 }
 0x207   :  { %p488_p3 = pnand %p486_p2, %p483_p1 }
 0x209   :  { %491 = shalt.err (!%p488_p3)
}
 0x20a   :  { %287 = dma.vmem_to_hbm [thread:$0]  %s285_s8, 32, %s627_s5, [#allocation5]  }
 0x20b   :  { %496 = dma.done.wait [#allocation5], 32  }
 0x20c   :  { %497 = vsyncadd [#allocation5], 4294967264 }
 0x20d   :  { %291 = vsyncpa [#allocation4], 1 }
 0x20e   :  { %292 = vsyncpa [#allocation7], 1 }
 0x20f   :  { %293 = vsyncpa [#allocation5], 1 }

</bundles_post_ra>
